<compile_context>
chip_gen: v6e
topology: v6e:2x2x1
jax: 0.10.0
libtpu: 0.0.40
codegen_flags: <defaults>
</compile_context>

<pallas_src>
import functools

import jax
import jax.numpy as jnp
from jax import lax
from jax.experimental import pallas as pl
from jax.experimental.pallas import tpu as pltpu


def _col_to_row(v):
    """(K, 1) -> (1, K) without a 2-D transpose.

    Broadcast-multiply against an identity built from 2-D iotas plus a sublane
    reduction (cheap, well-supported lowering) instead of vxpose on a tiny,
    non-tile-aligned shape. `v` must be finite (alpha / 1/l are).
    """
    k = v.shape[0]
    rows = lax.broadcasted_iota(jnp.int32, (k, k), 0)
    cols = lax.broadcasted_iota(jnp.int32, (k, k), 1)
    eye = (rows == cols).astype(v.dtype)
    return jnp.sum(v * eye, axis=0, keepdims=True)


def _tiled_kernel(probs_ref, feats_ref, out_ref, m_sc, l_sc, acc_sc, *,
                  scale, hw, hw_t, mask_tail):
    """Grid = (B, C_tiles, HW_tiles).

    Blocks: probs_ref (1, K, HW_T), feats_ref (1, C_T, HW_T), out_ref (1, C_T, K).
    Scratch: m_sc / l_sc (K, 1) f32 running max / denominator, acc_sc (C_T, K) f32.
    """
    hw_i = pl.program_id(2)
    n_hw = pl.num_programs(2)

    @pl.when(hw_i == 0)
    def _():
        m_sc[...] = jnp.full_like(m_sc, -jnp.inf)
        l_sc[...] = jnp.zeros_like(l_sc)
        acc_sc[...] = jnp.zeros_like(acc_sc)

    p_raw = probs_ref[0].astype(jnp.float32)            # (K, HW_T), f32
    if scale != 1.0:
        p_raw = p_raw * scale
    f_raw = feats_ref[0]                                 # (C_T, HW_T), native dtype

    def step(p, f):
        # Online (flash-style) softmax update over the HW reduction axis.
        m_prev = m_sc[...]                               # (K, 1)
        m_new = jnp.maximum(m_prev, jnp.max(p, axis=-1, keepdims=True))
        alpha = jnp.exp(m_prev - m_new)                  # (K, 1)
        e = jnp.exp(p - m_new)                           # (K, HW_T), f32
        l_sc[...] = alpha * l_sc[...] + jnp.sum(e, axis=-1, keepdims=True)
        m_sc[...] = m_new
        # feats on the LHS: contraction on its lane dim -> only the tiny
        # softmax tile is transposed for the MXU. Accumulate in f32.
        part = lax.dot_general(
            f, e.astype(f.dtype),
            dimension_numbers=(((1,), (1,)), ((), ())),
            preferred_element_type=jnp.float32,
        )                                                # (C_T, K)
        acc_sc[...] = acc_sc[...] * _col_to_row(alpha) + part

    if mask_tail:
        # Interior steps: no masking work at all.
        @pl.when(hw_i < n_hw - 1)
        def _():
            step(p_raw, f_raw)

        # Tail step only: exclude the padded lanes from the softmax (-> -inf)
        # and zero them in feats so no garbage reaches the MXU.
        @pl.when(hw_i == n_hw - 1)
        def _():
            lane = lax.broadcasted_iota(jnp.int32, (1, hw_t), 1)
            valid = (hw_i * hw_t + lane) < hw            # (1, HW_T)
            step(jnp.where(valid, p_raw, -jnp.inf),
                 jnp.where(valid, f_raw, jnp.zeros_like(f_raw)))
    else:
        step(p_raw, f_raw)

    @pl.when(hw_i == n_hw - 1)
    def _():
        # Runs once per (b, c_tile): exact reciprocal is free here.
        inv_l = pl.reciprocal(l_sc[...], approx=False)
        out_ref[0] = (acc_sc[...] * _col_to_row(inv_l)).astype(out_ref.dtype)


def _small_kernel(probs_ref, feats_ref, out_ref, *, scale):
    """Single grid step over a tiny whole problem (kills per-step overhead)."""
    p = probs_ref[...].astype(jnp.float32)               # (B, K, HW)
    if scale != 1.0:
        p = p * scale
    m = jnp.max(p, axis=-1, keepdims=True)
    e = jnp.exp(p - m)
    w = e * pl.reciprocal(jnp.sum(e, axis=-1, keepdims=True), approx=False)
    f = feats_ref[...]                                   # (B, C, HW), native dtype
    ctx = jnp.einsum("bcs,bks->bck", f, w.astype(f.dtype),
                     preferred_element_type=jnp.float32)  # (B, C, K)
    out_ref[...] = ctx.astype(out_ref.dtype)


# ------------------------- chip / tiling heuristics -------------------------

def _tpu_generation():
    """Best-effort chip query: (tensorcores_per_chip, per-core VMEM ceiling)."""
    kind = ""
    try:
        kind = jax.devices()[0].device_kind.lower()
    except Exception:
        pass
    is_v7 = ("v7" in kind) or ("7x" in kind)
    num_tc = 2 if is_v7 else 1
    vmem = 0
    try:
        info = pltpu.get_tpu_info()
        vmem = int(getattr(info, "vmem_capacity_bytes", 0) or 0)
    except Exception:
        vmem = 0
    if vmem <= 0:
        vmem = (64 << 20) if is_v7 else (128 << 20)
    # Leave headroom below physical VMEM for compiler-internal scratch.
    ceiling = max(32 << 20, vmem - (8 << 20))
    return num_tc, ceiling


def _sublane(itemsize):
    return {4: 8, 2: 16, 1: 32}.get(itemsize, 8)


def _padded_bytes(rows, cols, dtype):
    """Bytes of a (rows, cols) tile after (sublane, 128) layout padding."""
    dt = jnp.dtype(dtype)
    sub = _sublane(dt.itemsize)
    pr = -(-rows // sub) * sub
    pc = -(-cols // 128) * 128
    return pr * pc * dt.itemsize


def _choose_c_tiles(c, b, itemsize, num_tc):
    # Split C only when a second TensorCore exists (v7x) and the batch axis
    # can't feed it (B == 1), and only if the split keeps dtype tile alignment
    # (f32: c_t % 8, bf16: c_t % 16).
    if num_tc < 2 or b != 1:
        return 1
    sub = _sublane(itemsize)
    if c >= 128 and c % (2 * sub) == 0:
        return 2
    return 1


def _choose_hw_tile(hw, c_tile, itemsize, target_bytes):
    # Whole-HW block if the feats slice is already small (also sidesteps the
    # 128-lane rule since the block then equals the full array dim).
    if c_tile * hw * itemsize <= target_bytes:
        return hw
    t = target_bytes // (c_tile * itemsize)
    t = max(512, (t // 512) * 512)          # 128-aligned, >= 512 lanes
    return min(t, hw)


# --------------------------------- wrapper ----------------------------------

def spatial_gather(feats, probs, scale=1.0, *, hw_tile=None, c_tiles=None,
                   fast_path=None):
    """feats: (B, C, H, W), probs: (B, K, H, W) -> (B, C, K, 1)."""
    B, C, H, W = feats.shape
    Bp, K, Hp, Wp = probs.shape
    assert B == Bp and (H, W) == (Hp, Wp), "feats/probs must share batch & spatial dims"
    HW = H * W
    scale = float(scale)

    probs_flat = probs.reshape(B, K, HW)
    feats_flat = feats.reshape(B, C, HW)
    itemsize = feats_flat.dtype.itemsize

    cost = pl.CostEstimate(
        flops=2 * B * K * C * HW,
        transcendentals=B * K * HW,
        bytes_accessed=(probs_flat.size * probs_flat.dtype.itemsize
                        + feats_flat.size * itemsize
                        + B * C * K * itemsize),
    )

    if fast_path is None:
        fast_path = (B * (K + C) * HW + B * C * K) * itemsize <= (1 << 20)

    if fast_path:
        out_ck = pl.pallas_call(
            functools.partial(_small_kernel, scale=scale),
            out_shape=jax.ShapeDtypeStruct((B, C, K), feats.dtype),
            grid_spec=pltpu.PrefetchScalarGridSpec(
                num_scalar_prefetch=0,
                grid=(1,),
                in_specs=[
                    pl.BlockSpec((B, K, HW), lambda i: (0, 0, 0)),
                    pl.BlockSpec((B, C, HW), lambda i: (0, 0, 0)),
                ],
                out_specs=pl.BlockSpec((B, C, K), lambda i: (0, 0, 0)),
            ),
            compiler_params=pltpu.CompilerParams(
                dimension_semantics=("arbitrary",)),
            cost_estimate=cost,
        )(probs_flat, feats_flat)
        return out_ck[..., None]

    num_tc, vmem_ceiling = _tpu_generation()

    n_ct = c_tiles if c_tiles is not None else _choose_c_tiles(C, B, itemsize, num_tc)
    assert C % n_ct == 0, "C must divide evenly into c_tiles"
    c_t = C // n_ct

    # Bigger feats blocks on 128-MiB-VMEM chips; ~8 MiB on v7x (64 MiB/TC).
    feats_blk_target = (8 << 20) if num_tc >= 2 else (12 << 20)
    hw_t = hw_tile if hw_tile is not None else _choose_hw_tile(
        HW, c_t, itemsize, feats_blk_target)
    assert hw_t == HW or hw_t % 128 == 0, "hw_tile must be 128-aligned or full HW"
    n_hw = pl.cdiv(HW, hw_t)
    mask_tail = (HW % hw_t) != 0

    # VMEM budget from (sublane,128)-padded shapes: double-buffered inputs,
    # double-buffered resident output, scratch; capped below physical VMEM.
    probs_blk = _padded_bytes(K, hw_t, probs_flat.dtype)
    feats_blk = _padded_bytes(c_t, hw_t, feats_flat.dtype)
    out_blk = _padded_bytes(c_t, K, feats.dtype)
    scratch_b = 2 * _padded_bytes(K, 1, jnp.float32) + _padded_bytes(c_t, K, jnp.float32)
    need = 2 * (probs_blk + feats_blk) + 2 * out_blk + scratch_b
    vmem_limit = int(min(vmem_ceiling, max(32 << 20, need + (8 << 20))))

    kernel = functools.partial(
        _tiled_kernel, scale=scale, hw=HW, hw_t=hw_t, mask_tail=mask_tail)

    out_ck = pl.pallas_call(
        kernel,
        out_shape=jax.ShapeDtypeStruct((B, C, K), feats.dtype),
        grid_spec=pltpu.PrefetchScalarGridSpec(
            num_scalar_prefetch=0,
            grid=(B, n_ct, n_hw),
            in_specs=[
                pl.BlockSpec((1, K, hw_t), lambda b, c, h: (b, 0, h)),
                pl.BlockSpec((1, c_t, hw_t), lambda b, c, h: (b, c, h)),
            ],
            out_specs=pl.BlockSpec((1, c_t, K), lambda b, c, h: (b, c, 0)),
            scratch_shapes=[
                pltpu.VMEM((K, 1), jnp.float32),    # running max
                pltpu.VMEM((K, 1), jnp.float32),    # running denominator
                pltpu.VMEM((c_t, K), jnp.float32),  # context accumulator
            ],
        ),
        compiler_params=pltpu.CompilerParams(
            dimension_semantics=("parallel", "parallel", "arbitrary"),
            vmem_limit_bytes=vmem_limit,
        ),
        cost_estimate=cost,
    )(probs_flat, feats_flat)

    return out_ck[..., None]


# --------------------------------- testing ----------------------------------

def _reference(feats, probs, scale=1.0):
    B, C, H, W = feats.shape
    K = probs.shape[1]
    p = probs.reshape(B, K, H * W).astype(jnp.float32)
    f = feats.reshape(B, C, H * W).astype(jnp.float32).transpose(0, 2, 1)
    p = jax.nn.softmax(scale * p, axis=2)
    ctx = jnp.einsum("bks,bsc->bkc", p, f)
    return jnp.transpose(ctx, (0, 2, 1))[..., None].astype(feats.dtype)


def _check(name, feats, probs, scale, atol, rtol, **kw):
    out = jax.block_until_ready(spatial_gather(feats, probs, scale, **kw))
    ref = _reference(feats, probs, scale)
    assert out.shape == ref.shape, (name, out.shape, ref.shape)
    o32 = out.astype(jnp.float32)
    r32 = ref.astype(jnp.float32)
    err = float(jnp.max(jnp.abs(o32 - r32)))
    assert jnp.allclose(o32, r32, atol=atol, rtol=rtol), (name, err)


if __name__ == "__main__":
    key = jax.random.PRNGKey(0)
    k1, k2, k3, k4, k5, k6 = jax.random.split(key, 6)

    # 1) Tiny problem (toy usage) -> single-step fast path.
    B, C, K, H, W = 2, 32, 4, 16, 16
    feats = jax.random.normal(k1, (B, C, H, W), dtype=jnp.float32)
    probs = jax.random.normal(k2, (B, K, H, W), dtype=jnp.float32)
    _check("fast", feats, probs, 1.0, atol=1e-4, rtol=1e-4)

    # 2) Tiled path: multi-tile flash softmax over a ragged HW (gated tail mask,
    #    exact reciprocal at finalize -> tight tolerance).
    B, C, K, H, W = 2, 32, 5, 18, 37          # HW = 666 -> tiles of 256 + masked tail
    feats = jax.random.normal(k3, (B, C, H, W), dtype=jnp.float32)
    probs = jax.random.normal(k4, (B, K, H, W), dtype=jnp.float32)
    _check("tiled", feats, probs, 2.0, atol=1e-3, rtol=1e-3,
           hw_tile=256, fast_path=False)

    # 3) Tiled path with a forced C split (exercises the v7x dual-TC path on
    #    any chip) and bf16 activations (bf16 feats stay bf16 on the MXU).
    B, C, K, H, W = 1, 128, 3, 20, 20         # HW = 400 -> tiles of 128 + masked tail
    feats = jax.random.normal(k5, (B, C, H, W), dtype=jnp.bfloat16)
    probs = jax.random.normal(k6, (B, K, H, W), dtype=jnp.bfloat16)
    _check("tiled_ct", feats, probs, 1.0, atol=2e-2, rtol=2e-2,
           hw_tile=128, c_tiles=2, fast_path=False)

    print("KERNEL_OK")
</pallas_src>

<mosaic_0001>
module attributes {stable_mosaic.version = 11 : i64} {
  func.func @_small_kernel(%arg0: i32, %arg1: memref<2x4x256xf32, #tpu.memory_space<vmem>>, %arg2: memref<2x32x256xf32, #tpu.memory_space<vmem>>, %arg3: memref<2x32x4xf32, #tpu.memory_space<vmem>>) attributes {dimension_semantics = [#tpu.dimension_semantics<arbitrary>], iteration_bounds = array<i64: 1>, scalar_prefetch = 0 : i64, scratch_operands = 0 : i64, tpu.core_type = #tpu.core_type<tc>, window_params = [{pipeline_mode = #tpu.pipeline_mode<synchronous>, transform_indices = @transform_0, window_bounds = array<i64: 2, 4, 256>}, {pipeline_mode = #tpu.pipeline_mode<synchronous>, transform_indices = @transform_1, window_bounds = array<i64: 2, 32, 256>}, {pipeline_mode = #tpu.pipeline_mode<synchronous>, transform_indices = @transform_2, window_bounds = array<i64: 2, 32, 4>}]} {
    %c0 = arith.constant 0 : index
    %c0_0 = arith.constant 0 : index
    %c0_1 = arith.constant 0 : index
    %0 = vector.load %arg1[%c0, %c0_0, %c0_1] : memref<2x4x256xf32, #tpu.memory_space<vmem>>, vector<2x4x256xf32>
    %cst = arith.constant dense<0xFF800000> : vector<2x4xf32>
    %1 = vector.multi_reduction <maximumf>, %0, %cst [2] : vector<2x4x256xf32> to vector<2x4xf32>
    %2 = vector.shape_cast %1 : vector<2x4xf32> to vector<2x4x1xf32>
    %3 = vector.broadcast %2 : vector<2x4x1xf32> to vector<2x4x256xf32>
    %4 = arith.subf %0, %3 : vector<2x4x256xf32>
    %5 = math.exp %4 : vector<2x4x256xf32>
    %cst_2 = arith.constant dense<0.000000e+00> : vector<2x4xf32>
    %6 = vector.multi_reduction <add>, %5, %cst_2 [2] : vector<2x4x256xf32> to vector<2x4xf32>
    %7 = vector.shape_cast %6 : vector<2x4xf32> to vector<2x4x1xf32>
    %8 = tpu.reciprocal %7 : vector<2x4x1xf32> -> vector<2x4x1xf32>
    %9 = vector.broadcast %8 : vector<2x4x1xf32> to vector<2x4x256xf32>
    %10 = arith.mulf %5, %9 : vector<2x4x256xf32>
    %c0_3 = arith.constant 0 : index
    %c0_4 = arith.constant 0 : index
    %c0_5 = arith.constant 0 : index
    %11 = vector.load %arg2[%c0_3, %c0_4, %c0_5] : memref<2x32x256xf32, #tpu.memory_space<vmem>>, vector<2x32x256xf32>
    "tpu.trace_start"() <{level = 10 : i32, message = "bcs,bks->bck"}> : () -> ()
    %cst_6 = arith.constant dense<0.000000e+00> : vector<2x32x4xf32>
    %12 = tpu.matmul %11, %10, %cst_6 {dimension_numbers = #tpu.dot_dimension_numbers<[2], [2], [1], [1], [0, 0, 0, 1, 1, 1], [0], [0]>} : vector<2x32x256xf32>, vector<2x4x256xf32>, vector<2x32x4xf32> -> vector<2x32x4xf32>
    "tpu.trace_stop"() : () -> ()
    %c0_7 = arith.constant 0 : index
    %c0_8 = arith.constant 0 : index
    %c0_9 = arith.constant 0 : index
    %13 = vector.load %arg3[%c0_7, %c0_8, %c0_9] : memref<2x32x4xf32, #tpu.memory_space<vmem>>, vector<2x32x4xf32>
    tpu.vector_store %arg3[%c0_7, %c0_8, %c0_9], %12 {strides = array<i32>} : memref<2x32x4xf32, #tpu.memory_space<vmem>>, vector<2x32x4xf32>,
    return
  }
  func.func @transform_0(%arg0: i32) -> (i32, i32, i32) {
    %c0_i32 = arith.constant 0 : i32
    %c0_i32_0 = arith.constant 0 : i32
    %c0_i32_1 = arith.constant 0 : i32
    %c0_i32_2 = arith.constant 0 : i32
    return %c0_i32, %c0_i32_0, %c0_i32_1 : i32, i32, i32
  }
  func.func @transform_1(%arg0: i32) -> (i32, i32, i32) {
    %c0_i32 = arith.constant 0 : i32
    %c0_i32_0 = arith.constant 0 : i32
    %c0_i32_1 = arith.constant 0 : i32
    %c0_i32_2 = arith.constant 0 : i32
    return %c0_i32, %c0_i32_0, %c0_i32_1 : i32, i32, i32
  }
  func.func @transform_2(%arg0: i32) -> (i32, i32, i32) {
    %c0_i32 = arith.constant 0 : i32
    %c0_i32_0 = arith.constant 0 : i32
    %c0_i32_1 = arith.constant 0 : i32
    %c0_i32_2 = arith.constant 0 : i32
    return %c0_i32, %c0_i32_0, %c0_i32_1 : i32, i32, i32
  }
}

</mosaic_0001>

<bundles_post_ra>
// kernel: tpu_custom_call.1
= control target key start
LH: loop header
LB: loop body
LE: loop exit
PB: predicated region body
PF: predicated region fallthrough
CT: control target
= control target key end

     0   :  { %7 = vsyncpa [#allocation3], 0  ;;  %s456_s0 = inlined_call_operand.hbm [shape: f32[2,4,256], index: 0, kind: input, shape index: {}]   ;;  %s457_s1 = inlined_call_operand.hbm [shape: f32[2,32,256], index: 1, kind: input, shape index: {}]   ;;  %s458_s2 = inlined_call_operand.vmem [shape: f32[2,32,4], index: 2, kind: output, shape index: {}]  }
   0x1   :  { %8 = vsyncpa [#allocation5], 0  ;;  %s388_s9 = smov [#allocation2]  }
   0x2   :  { %s14_s10 = sshll.u32 %s388_s9, 4  ;;  %s15_s10 = int_to_ptr.vmem [resolvable:$true] %s14_s10 }
   0x3   :  { %s352_s11 = scalar_lea.vmem %s15_s10, 256  ;;  %p357_p1 = scmp.lt.s32.totalorder %s15_s10, %s15_s10 }
   0x4   :  { %p353_p0 = scmp.ne.s32.totalorder %s15_s10, %s352_s11  ;;  %p358_p2 = scmp.lt.s32.totalorder %s352_s11, %s352_s11 }
   0x6   :  { %p359_p3 = por %p358_p2, %p357_p1 }
   0x8   :  { %p360_p4 = pnand %p359_p3, %p353_p0 }
   0xa   :  { %363 = shalt.err (!%p360_p4)
}
   0xb   :  { %s389_s12 = smov 128   ;;  %s390_s13 = smov 8  }
   0xc   :  { %20 = dma.hbm_to_vmem [thread:$0]  %s456_s0, 256, %s15_s10, [#allocation3], %s389_s12, %s389_s12, %s390_s13  }
   0xd   :  { %s391_s16 = smov [#allocation4]  }
   0xe   :  { %s26_s17 = sshll.u32 %s391_s16, 4  ;;  %s27_s17 = int_to_ptr.vmem [resolvable:$true] %s26_s17 }
   0xf   :  { %s372_s18 = scalar_lea.vmem %s27_s17, 2048  ;;  %p377_p6 = scmp.lt.s32.totalorder %s27_s17, %s27_s17 }
  0x10   :  { %p373_p5 = scmp.ne.s32.totalorder %s27_s17, %s372_s18  ;;  %p378_p7 = scmp.lt.s32.totalorder %s372_s18, %s372_s18 }
  0x12   :  { %p379_p8 = por %p378_p7, %p377_p6 }
  0x14   :  { %p380_p9 = pnand %p379_p8, %p373_p5 }
  0x16   :  { %383 = shalt.err (!%p380_p9)
}
  0x17   :  { %s392_s19 = smov 256   ;;  %s393_s20 = smov 16  }
  0x18   :  { %32 = dma.hbm_to_vmem [thread:$0]  %s457_s1, 2048, %s27_s17, [#allocation5], %s392_s19, %s392_s19, %s393_s20  }
  0x19   :  { %384 = dma.done.wait [#allocation3], 256  }
  0x1a   :  { %385 = vsyncadd [#allocation3], 4294967040 }
  0x1b   :  { %386 = dma.done.wait [#allocation5], 2048  }
  0x1c   :  { %387 = vsyncadd [#allocation5], 4294965248  ;;  %vm47_vm0 = vcmask 1043456   ;;  %v39_v0 = vld [vmem:[#allocation2] sm:$0xff]  ;;  %v40_v1 = vld [vmem:[#allocation2 + $0x8] sm:$0xff]  ;;  %v63_v12 = vlaneseq  ;;  %vm312_vm1 = vcmask 31744  }
  0x1d   :  { %v43_v2 = vcombine.high %v39_v0, %v39_v0  ;;  %v48_v3 = vsel %vm47_vm0, %v39_v0, -inf  ;;  %v44_v4 = vcombine.high %v40_v1, %v40_v1  ;;  %v53_v6 = vsel %vm47_vm0, %v40_v1, -inf  ;;  %v121_v34 = vld [vmem:[#allocation4 + $0x8] sm:$0xff]  ;;  %v120_v45 = vld [vmem:[#allocation4] sm:$0xff]  ;;  %v123_v47 = vld [vmem:[#allocation4 + $0x18] sm:$0xff] }
  0x1e   :  { %v394_v10 = vmov 839922192   ;;  %v64_v14 = vshrl.u32 %v63_v12, 7  ;;  %203 = vmatprep.mubr.f32.mxu0 %v121_v34  ;;  %v129_v35 = vld [vmem:[#allocation4 + $0x48] sm:$0xff]  ;;  %v128_v48 = vld [vmem:[#allocation4 + $0x40] sm:$0xff]  ;;  %v122_v49 = vld [vmem:[#allocation4 + $0x10] sm:$0xff] }
  0x1f   :  { %v49_v5 = vsel %vm47_vm0, %v43_v2, -inf  ;;  %v54_v7 = vsel %vm47_vm0, %v44_v4, -inf  ;;  %v61_v11 = vunpack.c.l.s4 %v394_v10  ;;  %291 = vmatprep.mubr.f32.mxu1 %v129_v35  ;;  %v131_v50 = vld [vmem:[#allocation4 + $0x58] sm:$0xff]  ;;  %v125_v51 = vld [vmem:[#allocation4 + $0x28] sm:$0xff]  ;;  %v130_v52 = vld [vmem:[#allocation4 + $0x50] sm:$0xff] }
  0x20   :  { %v50_v8 = vmax.f32 %v48_v3, %v49_v5  ;;  %v55_v9 = vmax.f32 %v53_v6, %v54_v7  ;;  %v124_v53 = vld [vmem:[#allocation4 + $0x20] sm:$0xff]  ;;  %v133_v54 = vld [vmem:[#allocation4 + $0x68] sm:$0xff]  ;;  %v127_v55 = vld [vmem:[#allocation4 + $0x38] sm:$0xff] }
  0x21   :  { %v62_v13 = vunpack.c.0.s8 %v61_v11  ;;  %v132_v56 = vld [vmem:[#allocation4 + $0x60] sm:$0xff]  ;;  %v126_v57 = vld [vmem:[#allocation4 + $0x30] sm:$0xff]  ;;  %v135_v58 = vld [vmem:[#allocation4 + $0x78] sm:$0xff] }
  0x22   :  { %51 = vmax.xlane.f32.xlu0 %v50_v8  ;;  %v134_v59 = vld [vmem:[#allocation4 + $0x70] sm:$0xff] }
  0x23   :  { %v65_v15 = vsub.s32 %v62_v13, %v64_v14 }
  0x26   :  { %56 = vmax.xlane.f32.xlu0 %v55_v9 }
  0xab   :  { %v52_v16 = vpop.xlane.xlu0 %51 }
  0xac   :  { %v66_v17 = vrot.slane %v52_v16, %v65_v15 }
  0xae   :  { %v76_v18 = vsub.f32 %v39_v0, %v66_v17 }
  0xaf   :  { %v57_v19 = vpop.xlane.xlu0 %56 }
  0xb0   :  { %v78_v20 = vmul.f32 1.442695, %v76_v18  ;;  %v73_v21 = vrot.slane %v57_v19, %v65_v15 }
  0xb2   :  { %336 = vpow2.f32 %v78_v20  ;;  %v77_v22 = vsub.f32 %v40_v1, %v73_v21 }
  0xb4   :  { %v80_v23 = vmul.f32 1.442695, %v77_v22 }
  0xb6   :  { %338 = vpow2.f32 %v80_v23 }
  0xbf   :  { %v337_v24 = vpop.eup %336 }
  0xc0   :  { %v84_v25 = vcombine.high %v337_v24, %v337_v24  ;;  %v88_v26 = vsel %vm47_vm0, %v337_v24, 0.0 }
  0xc2   :  { %v89_v27 = vsel %vm47_vm0, %v84_v25, 0.0 }
  0xc3   :  { %v339_v28 = vpop.eup %338  ;;  %v90_v29 = vadd.f32 %v89_v27, %v88_v26 }
  0xc4   :  { %v85_v30 = vcombine.high %v339_v28, %v339_v28  ;;  %v93_v31 = vsel %vm47_vm0, %v339_v28, 0.0 }
  0xc5   :  { %91 = vadd.xlane.f32.xlu1 %v90_v29 }
  0xc6   :  { %v94_v32 = vsel %vm47_vm0, %v85_v30, 0.0 }
  0xc7   :  { %v95_v33 = vadd.f32 %v94_v32, %v93_v31 }
  0xc9   :  { %96 = vadd.xlane.f32.xlu1 %v95_v33 }
 0x14e   :  { %v92_v36 = vpop.xlane.xlu1 %91 }
 0x14f   :  { %340 = vrcp.f32 %v92_v36 }
 0x152   :  { %v97_v37 = vpop.xlane.xlu1 %96 }
 0x153   :  { %342 = vrcp.f32 %v97_v37 }
 0x15c   :  { %v341_v38 = vpop.eup %340 }
 0x15d   :  { %v108_v39 = vrot.slane %v341_v38, %v65_v15 }
 0x15f   :  { %v118_v40 = vmul.f32 %v337_v24, %v108_v39 }
 0x160   :  { %v343_v41 = vpop.eup %342 }
 0x161   :  { %v137_v42 = vcombine.high %v118_v40, %v118_v40  ;;  %v115_v43 = vrot.slane %v343_v41, %v65_v15 }
 0x163   :  { %169 = vmatprep.subr.mxu0 %v137_v42  ;;  %v119_v44 = vmul.f32 %v339_v28, %v115_v43 }
 0x164   :  { %170 = vmatpush1.xpose.msra.mxu0 %v118_v40 }
 0x165   :  { %v225_v46 = vcombine.high %v119_v44, %v119_v44 }
 0x167   :  { %257 = vmatprep.subr.mxu1 %v225_v46  ;;  %204 = vmatmul.mubr.f32.vlgmr.msra.gmra.mxu0 %v120_v45 }
 0x168   :  { %258 = vmatpush1.xpose.msra.mxu1 %v119_v44  ;;  %208 = vmatprep.mubr.f32.mxu0 %v123_v47 }
 0x16b   :  { %292 = vmatmul.mubr.f32.vlgmr.msra.gmra.mxu1 %v128_v48  ;;  %209 = vmatmul.mubr.f32.gmra.mxu0 %v122_v49 }
 0x16c   :  { %296 = vmatprep.mubr.f32.mxu1 %v131_v50  ;;  %213 = vmatprep.mubr.f32.mxu0 %v125_v51 }
 0x16f   :  { %297 = vmatmul.mubr.f32.gmra.mxu1 %v130_v52  ;;  %214 = vmatmul.mubr.f32.gmra.mxu0 %v124_v53 }
 0x170   :  { %301 = vmatprep.mubr.f32.mxu1 %v133_v54  ;;  %218 = vmatprep.mubr.f32.mxu0 %v127_v55 }
 0x173   :  { %302 = vmatmul.mubr.f32.gmra.mxu1 %v132_v56  ;;  %219 = vmatmul.mubr.f32.gmra.mxu0 %v126_v57 }
 0x174   :  { %306 = vmatprep.mubr.f32.mxu1 %v135_v58 }
 0x177   :  { %307 = vmatmul.mubr.f32.gmra.mxu1 %v134_v59 }
 0x227   :  { %v205_v60 = vpop.f32.mrf.mxu0 }
 0x228   :  { %313 = vst.msk [vmem:[%s458_s2] sm:$0xff] %vm312_vm1, %v205_v60 }
 0x229   :  { %v207_v61 = vpop.f32.mrf.mxu0 }
 0x22b   :  { %v293_v62 = vpop.f32.mrf.mxu1  ;;  %v210_v63 = vpop.f32.mrf.mxu0 }
 0x22c   :  { %317 = vst.msk [vmem:[%s458_s2 + $0x20] sm:$0xff] %vm312_vm1, %v293_v62  ;;  %314 = vst.msk [vmem:[%s458_s2 + $0x8] sm:$0xff] %vm312_vm1, %v210_v63 }
 0x22d   :  { %v295_v0 = vpop.f32.mrf.mxu1  ;;  %v212_v1 = vpop.f32.mrf.mxu0 }
 0x22f   :  { %v298_v2 = vpop.f32.mrf.mxu1  ;;  %v215_v3 = vpop.f32.mrf.mxu0 }
 0x230   :  { %318 = vst.msk [vmem:[%s458_s2 + $0x28] sm:$0xff] %vm312_vm1, %v298_v2  ;;  %315 = vst.msk [vmem:[%s458_s2 + $0x10] sm:$0xff] %vm312_vm1, %v215_v3 }
 0x231   :  { %v300_v4 = vpop.f32.mrf.mxu1  ;;  %v217_v5 = vpop.f32.mrf.mxu0 }
 0x233   :  { %v303_v6 = vpop.f32.mrf.mxu1  ;;  %v220_v7 = vpop.f32.mrf.mxu0 }
 0x234   :  { %319 = vst.msk [vmem:[%s458_s2 + $0x30] sm:$0xff] %vm312_vm1, %v303_v6  ;;  %316 = vst.msk [vmem:[%s458_s2 + $0x18] sm:$0xff] %vm312_vm1, %v220_v7 }
 0x235   :  { %v305_v8 = vpop.f32.mrf.mxu1  ;;  %v222_v9 = vpop.f32.mrf.mxu0 }
 0x237   :  { %v308_v10 = vpop.f32.mrf.mxu1 }
 0x238   :  { %320 = vst.msk [vmem:[%s458_s2 + $0x38] sm:$0xff] %vm312_vm1, %v308_v10 }
 0x239   :  { %v310_v11 = vpop.f32.mrf.mxu1 }
 0x23a   :  { %325 = vsyncpa [#allocation3], 1 }
 0x23b   :  { %326 = vsyncpa [#allocation5], 1 }

</bundles_post_ra>
